<compile_context>
chip_gen: v7x
topology: tpu7x:2x2x1
jax: 0.10.0
libtpu: 0.0.40
codegen_flags: <defaults>
</compile_context>

<pallas_src>
import functools

import jax
import jax.numpy as jnp
from jax import lax
from jax.experimental import pallas as pl
from jax.experimental.pallas import tpu as pltpu


def _round_up(x, m):
    return (x + m - 1) // m * m


def _gcn_body(a_ref, h_ref, w_ref, b_ref, o_ref, acc_ref, *,
              d_valid, tk, h_resident):
    """Accumulate A_tile @ H over k; epilogue: (@W) + b, ReLU, row softmax."""
    k = pl.program_id(1)

    @pl.when(k == 0)
    def _init():
        acc_ref[...] = jnp.zeros_like(acc_ref)

    if h_resident:
        # H is fully resident in VMEM; slice the k-chunk in-kernel.
        start = pl.multiple_of(k * tk, tk)
        h_blk = h_ref[pl.ds(start, tk), :]
    else:
        h_blk = h_ref[...]

    # Dominant N x N contraction: bf16 operands on the MXU, f32 accumulation.
    acc_ref[...] += jnp.dot(a_ref[...], h_blk,
                            preferred_element_type=jnp.float32)

    @pl.when(k == pl.num_programs(1) - 1)
    def _epilogue():
        acc = acc_ref[...]
        if w_ref is not None:
            # Project once per row tile (not per k step).
            z = jnp.dot(acc.astype(jnp.bfloat16), w_ref[...],
                        preferred_element_type=jnp.float32)
        else:
            z = acc
        z = z + b_ref[...]
        z = jnp.maximum(z, 0.0)                              # ReLU
        # Masked row softmax over the valid feature columns only.
        col = lax.broadcasted_iota(jnp.int32, z.shape, 1)
        valid = col < d_valid
        z = jnp.where(valid, z, -1e30)                       # finite mask (no inf)
        m = jnp.max(z, axis=1, keepdims=True)
        e = jnp.exp(z - m)
        e = jnp.where(valid, e, 0.0)                         # no mass in padded cols
        s = jnp.sum(e, axis=1, keepdims=True)
        o_ref[...] = (e / s).astype(o_ref.dtype)             # exact normalization


def build_normalized_adjacency(edge_index, num_nodes, *, rows_pad=None,
                               cols_pad=None, dtype=jnp.float32):
    """D^{-1/2}(A + I)D^{-1/2}, emitted directly at padded shape / target dtype."""
    rows_pad = num_nodes if rows_pad is None else rows_pad
    cols_pad = num_nodes if cols_pad is None else cols_pad
    src = edge_index[0].astype(jnp.int32)
    dst = edge_index[1].astype(jnp.int32)
    a = jnp.zeros((rows_pad, cols_pad), jnp.float32)
    a = a.at[src, dst].set(1.0)
    idx = jnp.arange(num_nodes, dtype=jnp.int32)
    a = a.at[idx, idx].set(1.0)                               # add self loops
    deg = jnp.sum(a, axis=1)                                  # padded rows -> 0
    dinv = jnp.where(deg > 0.0, lax.rsqrt(deg), 0.0)          # [rows_pad]
    dcol = jnp.zeros((cols_pad,), jnp.float32).at[:num_nodes].set(dinv[:num_nodes])
    return (a * dinv[:, None] * dcol[None, :]).astype(dtype)


def _choose_tiles(n):
    if n >= 1024:
        tm = 512
    elif n >= 512:
        tm = 256
    elif n >= 128:
        tm = 128
    else:
        tm = _round_up(n, 8)
    if n >= 128:
        # v7x has two TensorCores: keep >= 2 tiles on the "parallel" row axis.
        while tm > 64 and _round_up(n, tm) // tm < 2:
            tm //= 2
    if n >= 2048:
        tk = 1024
    elif n >= 512:
        tk = 512
    elif n >= 256:
        tk = 256
    else:
        tk = 128
    return tm, tk


def gcn_pool_forward(x, edge_index, w, b, *, tm=None, tk=None):
    """softmax(relu(A_norm @ (x @ w) + b), axis=1).  x:[N,F], w:[F,D], b:[1,D]."""
    n, f = x.shape
    d = w.shape[1]

    auto_tm, auto_tk = _choose_tiles(n)
    tm = auto_tm if tm is None else tm
    tk = auto_tk if tk is None else tk

    apply_w_in_kernel = f <= d          # pair the N^2 contraction with min(F, D)
    c_in = f if apply_w_in_kernel else d

    d_pad = _round_up(max(d, 1), 128)   # lane-dense output
    c_pad = _round_up(max(c_in, 1), 128)
    n_pad_m = _round_up(n, tm)          # rows / contraction cols padded independently
    n_pad_k = _round_up(n, tk)

    # Adjacency built directly padded + bf16 (no extra N^2 pad/cast pass).
    # TODO(synk): on v7x an fp8(e4m3) adjacency would halve the dominant HBM
    # stream; left as f32->bf16 pending accuracy validation.
    a_p = build_normalized_adjacency(edge_index, n, rows_pad=n_pad_m,
                                     cols_pad=n_pad_k, dtype=jnp.bfloat16)

    bf16 = jnp.bfloat16
    if apply_w_in_kernel:
        h_p = jnp.zeros((n_pad_k, c_pad), bf16).at[:n, :f].set(x.astype(bf16))
        w_p = jnp.zeros((c_pad, d_pad), bf16).at[:f, :d].set(w.astype(bf16))
    else:
        # Pre-project X @ W once, emitting the padded bf16 H in a single pass.
        x_b = jnp.zeros((n_pad_k, f), bf16).at[:n, :].set(x.astype(bf16))
        w_b = jnp.zeros((f, d_pad), bf16).at[:, :d].set(w.astype(bf16))
        h_p = jnp.dot(x_b, w_b, preferred_element_type=jnp.float32).astype(bf16)
        w_p = None
    b_p = jnp.zeros((1, d_pad), jnp.float32).at[:, :d].set(
        jnp.asarray(b, jnp.float32).reshape(1, d))

    # Keep H fully VMEM-resident (fetched once) when small enough.
    h_resident = n_pad_k * c_pad * 2 <= 8 * 1024 * 1024

    grid = (n_pad_m // tm, n_pad_k // tk)

    if h_resident:
        h_spec = pl.BlockSpec((n_pad_k, c_pad), lambda i, k: (0, 0))
    else:
        h_spec = pl.BlockSpec((tk, c_pad), lambda i, k: (k, 0))

    in_specs = [pl.BlockSpec((tm, tk), lambda i, k: (i, k)),   # A row/k tile
                h_spec]                                         # H (resident or streamed)
    operands = [a_p, h_p]
    if apply_w_in_kernel:
        in_specs.append(pl.BlockSpec((c_pad, d_pad), lambda i, k: (0, 0)))  # W resident
        operands.append(w_p)
    in_specs.append(pl.BlockSpec((1, d_pad), lambda i, k: (0, 0)))          # bias resident
    operands.append(b_p)

    body = functools.partial(_gcn_body, d_valid=d, tk=tk, h_resident=h_resident)
    if apply_w_in_kernel:
        def kernel(a_ref, h_ref, w_ref, b_ref, o_ref, acc_ref):
            body(a_ref, h_ref, w_ref, b_ref, o_ref, acc_ref)
    else:
        def kernel(a_ref, h_ref, b_ref, o_ref, acc_ref):
            body(a_ref, h_ref, None, b_ref, o_ref, acc_ref)

    # Explicit VMEM budget (keeps the same tiling legal on v7x's 64 MiB).
    h_bytes = (2 * n_pad_k * c_pad * 2) if h_resident else (2 * tk * c_pad * 2)
    budget = (2 * tm * tk * 2                                   # A (double-buffered bf16)
              + h_bytes                                         # H
              + (2 * c_pad * d_pad * 2 if apply_w_in_kernel else 0)  # W
              + 2 * d_pad * 4                                   # bias
              + tm * c_pad * 4                                  # f32 accumulator
              + 2 * tm * d_pad * 4)                             # output (f32)
    vmem_limit = int(min(max(32 << 20, budget + (budget >> 2) + (2 << 20)), 56 << 20))

    out_p = pl.pallas_call(
        kernel,
        out_shape=jax.ShapeDtypeStruct((n_pad_m, d_pad), jnp.float32),
        grid=grid,
        in_specs=in_specs,
        out_specs=pl.BlockSpec((tm, d_pad), lambda i, k: (i, 0)),
        scratch_shapes=[pltpu.VMEM((tm, c_pad), jnp.float32)],
        compiler_params=pltpu.CompilerParams(
            dimension_semantics=("parallel", "arbitrary"),
            vmem_limit_bytes=vmem_limit,
        ),
    )(*operands)

    return out_p[:n, :d]


def glorot(key, shape):
    fan_in, fan_out = shape
    limit = jnp.sqrt(6.0 / (fan_in + fan_out))
    return jax.random.uniform(key, shape, jnp.float32, -limit, limit)


def _reference(x, edge_index, w, b):
    a_norm = build_normalized_adjacency(edge_index, x.shape[0])  # f32, unpadded
    return jax.nn.softmax(jnp.maximum(a_norm @ (x @ w) + b, 0.0), axis=1)


if __name__ == "__main__":
    key = jax.random.PRNGKey(0)
    kx, kw, kb, kx2, kw2, kb2 = jax.random.split(key, 6)

    # Deterministic ring graph (both directions) on N=8 nodes.
    N = 8
    src = jnp.arange(N, dtype=jnp.int32)
    dst = (src + 1) % N
    edge_index = jnp.stack(
        [jnp.concatenate([src, dst]), jnp.concatenate([dst, src])], axis=0)

    # --- Case 1: length=16, dim=32 (F <= D -> W applied inside the kernel) ---
    LENGTH, DIM = 16, 32
    x = jax.random.normal(kx, (N, LENGTH), dtype=jnp.float32)
    w4 = glorot(kw, (LENGTH, DIM))
    b4 = jax.random.normal(kb, (1, DIM), jnp.float32) * 0.01

    out = jax.block_until_ready(gcn_pool_forward(x, edge_index, w4, b4))
    ref = _reference(x, edge_index, w4, b4)
    assert out.shape == (N, DIM)
    assert bool(jnp.allclose(jnp.sum(out, axis=1), 1.0, atol=1e-3))
    assert bool(jnp.allclose(out, ref, atol=3e-2, rtol=0.0))

    # --- Case 2: length=48, dim=16 (F > D -> X@W pre-projected outside) ---
    L2, D2 = 48, 16
    x2 = jax.random.normal(kx2, (N, L2), dtype=jnp.float32)
    w2 = glorot(kw2, (L2, D2))
    b2 = jax.random.normal(kb2, (1, D2), jnp.float32) * 0.01

    out2 = jax.block_until_ready(gcn_pool_forward(x2, edge_index, w2, b2))
    ref2 = _reference(x2, edge_index, w2, b2)
    assert out2.shape == (N, D2)
    assert bool(jnp.allclose(jnp.sum(out2, axis=1), 1.0, atol=1e-3))
    assert bool(jnp.allclose(out2, ref2, atol=5e-2, rtol=0.0))

    print("KERNEL_OK")
</pallas_src>

<mosaic_0001>
module attributes {stable_mosaic.version = 11 : i64} {
  func.func @kernel(%arg0: i32, %arg1: i32, %arg2: memref<8x128xbf16, #tpu.memory_space<vmem>>, %arg3: memref<128x128xbf16, #tpu.memory_space<vmem>>, %arg4: memref<128x128xbf16, #tpu.memory_space<vmem>>, %arg5: memref<1x128xf32, #tpu.memory_space<vmem>>, %arg6: memref<8x128xf32, #tpu.memory_space<vmem>>, %arg7: memref<8x128xf32, #tpu.memory_space<vmem>>) attributes {dimension_semantics = [#tpu.dimension_semantics<parallel>, #tpu.dimension_semantics<arbitrary>], iteration_bounds = array<i64: 1, 1>, scalar_prefetch = 0 : i64, scratch_operands = 1 : i64, tpu.core_type = #tpu.core_type<tc>, window_params = [{transform_indices = @transform_0, window_bounds = array<i64: 8, 128>}, {pipeline_mode = #tpu.pipeline_mode<synchronous>, transform_indices = @transform_1, window_bounds = array<i64: 128, 128>}, {pipeline_mode = #tpu.pipeline_mode<synchronous>, transform_indices = @transform_2, window_bounds = array<i64: 128, 128>}, {pipeline_mode = #tpu.pipeline_mode<synchronous>, transform_indices = @transform_3, window_bounds = array<i64: 1, 128>}, {transform_indices = @transform_4, window_bounds = array<i64: 8, 128>}]} {
    %c0_i32 = arith.constant 0 : i32
    %0 = arith.cmpi eq, %arg1, %c0_i32 : i32
    %1 = arith.extui %0 : i1 to i32
    %c0_i32_0 = arith.constant 0 : i32
    %2 = arith.cmpi ne, %1, %c0_i32_0 : i32
    scf.if %2 {
      %cst_9 = arith.constant 0.000000e+00 : f32
      %15 = vector.broadcast %cst_9 : f32 to vector<8x128xf32>
      %c0_10 = arith.constant 0 : index
      %c0_11 = arith.constant 0 : index
      %16 = vector.load %arg7[%c0_10, %c0_11] : memref<8x128xf32, #tpu.memory_space<vmem>>, vector<8x128xf32>
      tpu.vector_store %arg7[%c0_10, %c0_11], %15 {strides = array<i32>} : memref<8x128xf32, #tpu.memory_space<vmem>>, vector<8x128xf32>,
    } else {
    }
    %c128_i32 = arith.constant 128 : i32
    %3 = arith.muli %arg1, %c128_i32 : i32
    %4 = tpu.assume_multiple %3, 128 : i32
    %5 = arith.index_cast %4 : i32 to index
    %c0 = arith.constant 0 : index
    %6 = vector.load %arg3[%5, %c0] : memref<128x128xbf16, #tpu.memory_space<vmem>>, vector<128x128xbf16>
    %c0_1 = arith.constant 0 : index
    %c0_2 = arith.constant 0 : index
    %7 = vector.load %arg7[%c0_1, %c0_2] : memref<8x128xf32, #tpu.memory_space<vmem>>, vector<8x128xf32>
    %c0_3 = arith.constant 0 : index
    %c0_4 = arith.constant 0 : index
    %8 = vector.load %arg2[%c0_3, %c0_4] : memref<8x128xbf16, #tpu.memory_space<vmem>>, vector<8x128xbf16>
    %cst = arith.constant dense<0.000000e+00> : vector<8x128xf32>
    %9 = tpu.matmul %8, %6, %cst {dimension_numbers = #tpu.dot_dimension_numbers<[1], [0], [0], [1], [0, 0, 1, 1], [], []>} : vector<8x128xbf16>, vector<128x128xbf16>, vector<8x128xf32> -> vector<8x128xf32>
    %10 = arith.addf %7, %9 : vector<8x128xf32>
    %c0_5 = arith.constant 0 : index
    %c0_6 = arith.constant 0 : index
    %11 = vector.load %arg7[%c0_5, %c0_6] : memref<8x128xf32, #tpu.memory_space<vmem>>, vector<8x128xf32>
    tpu.vector_store %arg7[%c0_5, %c0_6], %10 {strides = array<i32>} : memref<8x128xf32, #tpu.memory_space<vmem>>, vector<8x128xf32>,
    %c0_i32_7 = arith.constant 0 : i32
    %12 = arith.cmpi eq, %arg1, %c0_i32_7 : i32
    %13 = arith.extui %12 : i1 to i32
    %c0_i32_8 = arith.constant 0 : i32
    %14 = arith.cmpi ne, %13, %c0_i32_8 : i32
    scf.if %14 {
      %c0_9 = arith.constant 0 : index
      %c0_10 = arith.constant 0 : index
      %15 = vector.load %arg7[%c0_9, %c0_10] : memref<8x128xf32, #tpu.memory_space<vmem>>, vector<8x128xf32>
      %16 = arith.truncf %15 : vector<8x128xf32> to vector<8x128xbf16>
      %c0_11 = arith.constant 0 : index
      %c0_12 = arith.constant 0 : index
      %17 = vector.load %arg4[%c0_11, %c0_12] : memref<128x128xbf16, #tpu.memory_space<vmem>>, vector<128x128xbf16>
      %cst_13 = arith.constant dense<0.000000e+00> : vector<8x128xf32>
      %18 = tpu.matmul %16, %17, %cst_13 {dimension_numbers = #tpu.dot_dimension_numbers<[1], [0], [0], [1], [0, 0, 1, 1], [], []>} : vector<8x128xbf16>, vector<128x128xbf16>, vector<8x128xf32> -> vector<8x128xf32>
      %c0_14 = arith.constant 0 : index
      %c0_15 = arith.constant 0 : index
      %19 = vector.load %arg5[%c0_14, %c0_15] : memref<1x128xf32, #tpu.memory_space<vmem>>, vector<1x128xf32>
      %20 = vector.broadcast %19 : vector<1x128xf32> to vector<8x128xf32>
      %21 = arith.addf %18, %20 : vector<8x128xf32>
      %cst_16 = arith.constant 0.000000e+00 : f32
      %22 = vector.broadcast %cst_16 : f32 to vector<8x128xf32>
      %23 = arith.maximumf %21, %22 : vector<8x128xf32>
      %24 = tpu.iota {dimensions = array<i32: 1>} : vector<8x128xi32>
      %c32_i32 = arith.constant 32 : i32
      %25 = vector.broadcast %c32_i32 : i32 to vector<8x128xi32>
      %26 = arith.cmpi slt, %24, %25 : vector<8x128xi32>
      %cst_17 = arith.constant -1.000000e+30 : f32
      %27 = vector.broadcast %cst_17 : f32 to vector<8x128xf32>
      %28 = arith.select %26, %23, %27 : vector<8x128xi1>, vector<8x128xf32>
      %cst_18 = arith.constant dense<0xFF800000> : vector<8xf32>
      %29 = vector.multi_reduction <maximumf>, %28, %cst_18 [1] : vector<8x128xf32> to vector<8xf32>
      %30 = vector.shape_cast %29 : vector<8xf32> to vector<8x1xf32>
      %31 = vector.broadcast %30 : vector<8x1xf32> to vector<8x128xf32>
      %32 = arith.subf %28, %31 : vector<8x128xf32>
      %33 = math.exp %32 : vector<8x128xf32>
      %cst_19 = arith.constant 0.000000e+00 : f32
      %34 = vector.broadcast %cst_19 : f32 to vector<8x128xf32>
      %35 = arith.select %26, %33, %34 : vector<8x128xi1>, vector<8x128xf32>
      %cst_20 = arith.constant dense<0.000000e+00> : vector<8xf32>
      %36 = vector.multi_reduction <add>, %35, %cst_20 [1] : vector<8x128xf32> to vector<8xf32>
      %37 = vector.shape_cast %36 : vector<8xf32> to vector<8x1xf32>
      %38 = vector.broadcast %37 : vector<8x1xf32> to vector<8x128xf32>
      %39 = arith.divf %35, %38 : vector<8x128xf32>
      %c0_21 = arith.constant 0 : index
      %c0_22 = arith.constant 0 : index
      %40 = vector.load %arg6[%c0_21, %c0_22] : memref<8x128xf32, #tpu.memory_space<vmem>>, vector<8x128xf32>
      tpu.vector_store %arg6[%c0_21, %c0_22], %39 {strides = array<i32>} : memref<8x128xf32, #tpu.memory_space<vmem>>, vector<8x128xf32>,
    } else {
    }
    return
  }
  func.func @transform_0(%arg0: i32, %arg1: i32) -> (i32, i32) {
    %c0_i32 = arith.constant 0 : i32
    return %arg0, %arg1 : i32, i32
  }
  func.func @transform_1(%arg0: i32, %arg1: i32) -> (i32, i32) {
    %c0_i32 = arith.constant 0 : i32
    %c0_i32_0 = arith.constant 0 : i32
    %c0_i32_1 = arith.constant 0 : i32
    return %c0_i32, %c0_i32_0 : i32, i32
  }
  func.func @transform_2(%arg0: i32, %arg1: i32) -> (i32, i32) {
    %c0_i32 = arith.constant 0 : i32
    %c0_i32_0 = arith.constant 0 : i32
    %c0_i32_1 = arith.constant 0 : i32
    return %c0_i32, %c0_i32_0 : i32, i32
  }
  func.func @transform_3(%arg0: i32, %arg1: i32) -> (i32, i32) {
    %c0_i32 = arith.constant 0 : i32
    %c0_i32_0 = arith.constant 0 : i32
    %c0_i32_1 = arith.constant 0 : i32
    return %c0_i32, %c0_i32_0 : i32, i32
  }
  func.func @transform_4(%arg0: i32, %arg1: i32) -> (i32, i32) {
    %c0_i32 = arith.constant 0 : i32
    %c0_i32_0 = arith.constant 0 : i32
    return %arg0, %c0_i32 : i32, i32
  }
}

</mosaic_0001>

<bundles_post_ra>
// kernel: tpu_custom_call.1
= control target key start
LH: loop header
LB: loop body
LE: loop exit
PB: predicated region body
PF: predicated region fallthrough
CT: control target
= control target key end

     0   :  { %9 = vsyncpa [#allocation4], 0  ;;  %s613_s0 = inlined_call_operand.hbm [shape: bf16[8,128], index: 0, kind: input, shape index: {}]   ;;  %s614_s1 = inlined_call_operand.hbm [shape: bf16[128,128], index: 1, kind: input, shape index: {}]   ;;  %s615_s2 = inlined_call_operand.hbm [shape: bf16[128,128], index: 2, kind: input, shape index: {}]   ;;  %s616_s3 = inlined_call_operand.vmem [shape: f32[1,128], index: 3, kind: input, shape index: {}]   ;;  %s617_s4 = inlined_call_operand.hbm [shape: f32[8,128], index: 4, kind: output, shape index: {}]  }
   0x1   :  { %10 = vsyncpa [#allocation7], 0 }
   0x2   :  { %11 = vsyncpa [#allocation5], 0  ;;  %s523_s15 = smov [#allocation6]   ;;  %s429_s19 = scalar_lea.hbm %s614_s1, 1024 }
   0x3   :  { %s27_s16 = sshll.u32 %s523_s15, 4  ;;  %p430_p0 = scmp.ne.s32.totalorder %s614_s1, %s429_s19  ;;  %s28_s16 = int_to_ptr.vmem [resolvable:$true] %s27_s16 }
   0x4   :  { %p433_p1 = scmp.lt.u32.totalorder %s429_s19, %s614_s1 }
   0x6   :  { %p435_p2 = pnand %p433_p1, %p430_p0 }
   0x8   :  { %438 = shalt.err (!%p435_p2)
}
   0x9   :  { %s439_s24 = scalar_lea.vmem %s28_s16, 1024  ;;  %p444_p4 = scmp.lt.s32.totalorder %s28_s16, %s28_s16 }
   0xa   :  { %p440_p3 = scmp.ne.s32.totalorder %s28_s16, %s439_s24  ;;  %p445_p5 = scmp.lt.s32.totalorder %s439_s24, %s439_s24 }
   0xc   :  { %p446_p6 = por %p445_p5, %p444_p4 }
   0xe   :  { %p447_p7 = pnand %p446_p6, %p440_p3 }
  0x10   :  { %450 = shalt.err (!%p447_p7)
}
  0x11   :  { %s524_s25 = smov 64   ;;  %s525_s26 = smov 4  }
  0x12   :  { %33 = dma.hbm_to_vmem [thread:$0]  %s614_s1, 1024, %s28_s16, [#allocation7], %s524_s25, %s524_s25, %s525_s26  }
  0x13   :  { %s526_s29 = smov [#allocation3]   ;;  %s527_s5 = smov [#allocation8]  }
  0x14   :  { %s18_s30 = sshll.u32 %s526_s29, 4  ;;  %s39_s6 = sshll.u32 %s527_s5, 4  ;;  %s19_s30 = int_to_ptr.vmem [resolvable:$true] %s18_s30  ;;  %s40_s6 = int_to_ptr.vmem [resolvable:$true] %s39_s6 }
  0x15   :  { %s451_s9 = scalar_lea.hbm %s613_s0, 64 }
  0x16   :  { %p452_p8 = scmp.ne.s32.totalorder %s613_s0, %s451_s9  ;;  %p455_p9 = scmp.lt.u32.totalorder %s451_s9, %s613_s0 }
  0x18   :  { %p457_p10 = pnand %p455_p9, %p452_p8 }
  0x1a   :  { %460 = shalt.err (!%p457_p10)
}
  0x1b   :  { %s461_s1 = scalar_lea.vmem %s19_s30, 64  ;;  %p466_p12 = scmp.lt.s32.totalorder %s19_s30, %s19_s30 }
  0x1c   :  { %p462_p11 = scmp.ne.s32.totalorder %s19_s30, %s461_s1  ;;  %p467_p13 = scmp.lt.s32.totalorder %s461_s1, %s461_s1 }
  0x1e   :  { %p468_p0 = por %p467_p13, %p466_p12 }
  0x20   :  { %p469_p1 = pnand %p468_p0, %p462_p11 }
  0x22   :  { %472 = shalt.err (!%p469_p1)
}
  0x23   :  { %21 = dma.hbm_to_vmem [thread:$0]  %s613_s0, 64, %s19_s30, [#allocation4]  }
  0x24   :  { %s473_s18 = scalar_lea.hbm %s615_s2, 1024 }
  0x25   :  { %p474_p2 = scmp.ne.s32.totalorder %s615_s2, %s473_s18  ;;  %p477_p3 = scmp.lt.u32.totalorder %s473_s18, %s615_s2 }
  0x27   :  { %p479_p4 = pnand %p477_p3, %p474_p2 }
  0x29   :  { %482 = shalt.err (!%p479_p4)
}
  0x2a   :  { %s483_s23 = scalar_lea.vmem %s40_s6, 1024  ;;  %p488_p6 = scmp.lt.s32.totalorder %s40_s6, %s40_s6 }
  0x2b   :  { %p484_p5 = scmp.ne.s32.totalorder %s40_s6, %s483_s23  ;;  %p489_p7 = scmp.lt.s32.totalorder %s483_s23, %s483_s23 }
  0x2d   :  { %p490_p8 = por %p489_p7, %p488_p6 }
  0x2f   :  { %p491_p9 = pnand %p490_p8, %p484_p5 }
  0x31   :  { %494 = shalt.err (!%p491_p9)
}
  0x32   :  { %45 = dma.hbm_to_vmem [thread:$0]  %s615_s2, 1024, %s40_s6, [#allocation7], %s524_s25, %s524_s25, %s525_s26  }
  0x33   :  { %517 = dma.done.wait [#allocation4], 64  }
  0x34   :  { %518 = vsyncadd [#allocation4], 4294967232 }
  0x35   :  { %519 = dma.done.wait [#allocation7], 2048  }
  0x36   :  { %520 = vsyncadd [#allocation7], 4294965248  ;;  %v528_v0 = vmov 0.0   ;;  %vm529_vm0 = vmmov 0   ;;  %v409_v1 = vld [vmem:[#allocation6] sm:$0xff]   ;;  %v410_v2 = vld [vmem:[#allocation6 + $0x8] sm:$0xff]   ;;  %v293_v23 = vlaneseq }
  0x37   :  { %361 = vmatprep.subr.bf16.mxu0 %v528_v0  ;;  %377 = vmatprep.mubr.msk.bf16.mxu0 %vm529_vm0, %v528_v0  ;;  %v411_v3 = vld [vmem:[#allocation6 + $0x10] sm:$0xff]   ;;  %v417_v4 = vld [vmem:[#allocation8] sm:$0xff]   ;;  %v412_v5 = vld [vmem:[#allocation6 + $0x18] sm:$0xff]  }
  0x38   :  { %381 = vmatprep.subr.bf16.mxu1 %v528_v0  ;;  %397 = vmatprep.mubr.msk.bf16.mxu1 %vm529_vm0, %v528_v0  ;;  %v418_v6 = vld [vmem:[#allocation8 + $0x8] sm:$0xff]   ;;  %v413_v7 = vld [vmem:[#allocation6 + $0x20] sm:$0xff]   ;;  %v419_v8 = vld [vmem:[#allocation8 + $0x10] sm:$0xff]   ;;  %v294_v25 = vand.u32 127, %v293_v23 }
  0x39   :  { %362 = vmatpush3.bf16.msra.mxu0 %v409_v1  ;;  %382 = vmatpush3.bf16.msra.mxu1 %v417_v4  ;;  %v414_v9 = vld [vmem:[#allocation6 + $0x28] sm:$0xff]   ;;  %v420_v10 = vld [vmem:[#allocation8 + $0x18] sm:$0xff]   ;;  %v415_v11 = vld [vmem:[#allocation6 + $0x30] sm:$0xff]  }
  0x3a   :  { %363 = vmatprep.subr.bf16.mxu0 %v528_v0  ;;  %383 = vmatprep.subr.bf16.mxu1 %v528_v0  ;;  %v421_v12 = vld [vmem:[#allocation8 + $0x20] sm:$0xff]   ;;  %v416_v13 = vld [vmem:[#allocation6 + $0x38] sm:$0xff]   ;;  %v422_v14 = vld [vmem:[#allocation8 + $0x28] sm:$0xff]   ;;  %vm295_vm1 = vcmp.lt.s32.totalorder %v294_v25, 32 }
  0x3b   :  { %v85_v15 = vld [vmem:[#allocation3] sm:$0xf]  ;;  %v423_v16 = vld [vmem:[#allocation8 + $0x30] sm:$0xff]  }
  0x3c   :  { %v424_v17 = vld [vmem:[#allocation8 + $0x38] sm:$0xff]  }
  0x3d   :  { %364 = vmatpush3.bf16.msra.mxu0 %v410_v2  ;;  %384 = vmatpush3.bf16.msra.mxu1 %v418_v6  ;;  %v334_v24 = vld [vmem:[%s616_s3] ss:$0 sm:$0xff]  ;;  %s530_s3 = smov [#allocation9]  }
  0x3e   :  { %365 = vmatprep.subr.bf16.mxu0 %v528_v0  ;;  %385 = vmatprep.subr.bf16.mxu1 %v528_v0  ;;  %s314_s26 = sshll.u32 %s530_s3, 4  ;;  %s315_s26 = int_to_ptr.vmem [resolvable:$true] %s314_s26 }
  0x3f   :  { %s495_s27 = scalar_lea.vmem %s315_s26, 128  ;;  %p500_p11 = scmp.lt.s32.totalorder %s315_s26, %s315_s26 }
  0x40   :  { %p496_p10 = scmp.ne.s32.totalorder %s315_s26, %s495_s27  ;;  %p501_p12 = scmp.lt.s32.totalorder %s495_s27, %s495_s27 }
  0x41   :  { %366 = vmatpush3.bf16.msra.mxu0 %v411_v3  ;;  %386 = vmatpush3.bf16.msra.mxu1 %v419_v8 }
  0x42   :  { %367 = vmatprep.subr.bf16.mxu0 %v528_v0  ;;  %387 = vmatprep.subr.bf16.mxu1 %v528_v0  ;;  %p502_p13 = por %p501_p12, %p500_p11 }
  0x44   :  { %p503_p0 = pnand %p502_p13, %p496_p10 }
  0x45   :  { %368 = vmatpush3.bf16.msra.mxu0 %v412_v5  ;;  %388 = vmatpush3.bf16.msra.mxu1 %v420_v10 }
  0x46   :  { %369 = vmatprep.subr.bf16.mxu0 %v528_v0  ;;  %389 = vmatprep.subr.bf16.mxu1 %v528_v0 }
  0x49   :  { %370 = vmatpush3.bf16.msra.mxu0 %v413_v7  ;;  %390 = vmatpush3.bf16.msra.mxu1 %v421_v12 }
  0x4a   :  { %371 = vmatprep.subr.bf16.mxu0 %v528_v0  ;;  %391 = vmatprep.subr.bf16.mxu1 %v528_v0 }
  0x4d   :  { %372 = vmatpush3.bf16.msra.mxu0 %v414_v9  ;;  %392 = vmatpush3.bf16.msra.mxu1 %v422_v14 }
  0x4e   :  { %373 = vmatprep.subr.bf16.mxu0 %v528_v0  ;;  %393 = vmatprep.subr.bf16.mxu1 %v528_v0 }
  0x51   :  { %374 = vmatpush3.bf16.msra.mxu0 %v415_v11  ;;  %394 = vmatpush3.bf16.msra.mxu1 %v423_v16 }
  0x52   :  { %375 = vmatprep.subr.bf16.mxu0 %v528_v0  ;;  %395 = vmatprep.subr.bf16.mxu1 %v528_v0 }
  0x55   :  { %376 = vmatpush3.bf16.msra.mxu0 %v416_v13  ;;  %396 = vmatpush3.bf16.msra.mxu1 %v424_v17 }
  0x58   :  { %378 = vmatmul.mubr.bf16.vlgmr.msra.gmra.mrb[0].mxu0 %v85_v15 }
 0x12b   :  { %v168_v18 = vpop.f32.mrb[0].mxu0 }
 0x12c   :  { %v180_v19 = vpack.c.bf16 %v168_v18, %v168_v18  ;;  %v379_v20 = vpop.f32.mrb[1].mxu0 }
 0x12d   :  { %v171_v21 = vpop.f32.mrb[2].mxu0 }
 0x12e   :  { %v380_v22 = vpop.f32.mrb[3].mxu0  ;;  %398 = vmatmul.mubr.bf16.vlgmr.msra.gmra.mrb[0].mxu1 %v180_v19 }
 0x201   :  { %v286_v26 = vpop.f32.mrb[0].mxu1 }
 0x202   :  { %v287_v27 = vadd.f32 %v334_v24, %v286_v26  ;;  %v399_v28 = vpop.f32.mrb[1].mxu1 }
 0x203   :  { %v289_v29 = vpop.f32.mrb[2].mxu1 }
 0x204   :  { %v292_v30 = vmax.f32 %v287_v27, 0.0  ;;  %v400_v31 = vpop.f32.mrb[3].mxu1 }
 0x206   :  { %v296_v32 = vsel %vm295_vm1, %v292_v30, -1e+30 }
 0x207   :  { %297 = vmax.xlane.f32.xlu0 %v296_v32 }
 0x294   :  { %v298_v33 = vpop.xlane.xlu0 %297 }
 0x295   :  { %v299_v34 = vsub.f32 %v296_v32, %v298_v33 }
 0x297   :  { %v300_v35 = vmul.f32 1.442695, %v299_v34 }
 0x299   :  { %425 = vpow2.f32 %v300_v35 }
 0x2a3   :  { %v426_v36 = vpop.eup %425 }
 0x2a4   :  { %v302_v37 = vsel %vm295_vm1, %v426_v36, 0.0 }
 0x2a5   :  { %303 = vadd.xlane.f32.xlu0 %v302_v37 }
 0x332   :  { %v304_v38 = vpop.xlane.xlu0 %303 }
 0x333   :  { %427 = vrcp.f32 %v304_v38 }
 0x33d   :  { %v428_v39 = vpop.eup %427 }
 0x33e   :  { %v306_v40 = vmul.f32 %v428_v39, %v302_v37 }
 0x340   :  { %307 = vst [vmem:[#allocation9] sm:$0xff] %v306_v40 }
 0x341   :  { %506 = shalt.err (!%p503_p0)
}
 0x342   :  { %s507_s30 = scalar_lea.hbm %s617_s4, 128 }
 0x343   :  { %p508_p1 = scmp.ne.s32.totalorder %s617_s4, %s507_s30  ;;  %p511_p2 = scmp.lt.u32.totalorder %s507_s30, %s617_s4 }
 0x345   :  { %p513_p3 = pnand %p511_p2, %p508_p1 }
 0x347   :  { %516 = shalt.err (!%p513_p3)
}
 0x348   :  { %317 = dma.vmem_to_hbm [thread:$0]  %s315_s26, 128, %s617_s4, [#allocation5]  }
 0x349   :  { %521 = dma.done.wait [#allocation5], 128  }
 0x34a   :  { %522 = vsyncadd [#allocation5], 4294967168 }
 0x34b   :  { %321 = vsyncpa [#allocation4], 1 }
 0x34c   :  { %322 = vsyncpa [#allocation7], 1 }
 0x34d   :  { %323 = vsyncpa [#allocation5], 1 }

</bundles_post_ra>
